<compile_context>
chip_gen: v7x
topology: tpu7x:2x2x1
jax: 0.10.0
libtpu: 0.0.40
codegen_flags: <defaults>
</compile_context>

<pallas_src>
import jax
import jax.numpy as jnp
from jax.experimental import pallas as pl
from jax.experimental.pallas import tpu as pltpu

BN_EPS = 1e-5
NORM_EPS = 1e-12  # F.normalize default eps


def proj_head_kernel(x_ref, w1_ref, b1_ref, w2_ref, b2_ref, o_ref):
    # x_ref:  (1, C_in, tile_hw)   channels on sublanes, pixels on lanes
    # w1_ref: (C_in, C_in)         BN already folded in
    # b1_ref: (C_in, 1)
    # w2_ref: (proj_dim, C_in)
    # b2_ref: (proj_dim, 1)
    # o_ref:  (1, proj_dim, tile_hw)
    x = x_ref[0].astype(jnp.float32)                            # (C_in, tile_hw)

    # --- 1x1 conv #1 (+ folded BN) + ReLU ---
    h = jnp.dot(w1_ref[...], x, preferred_element_type=jnp.float32) + b1_ref[...]
    h = jnp.maximum(h, 0.0)

    # --- 1x1 conv #2 ---
    z = jnp.dot(w2_ref[...], h, preferred_element_type=jnp.float32) + b2_ref[...]

    # --- L2 normalize over channel (sublane) axis: z / max(||z||, eps) ---
    sumsq = jnp.sum(z * z, axis=0, keepdims=True)               # (1, tile_hw) via XLU
    inv = jnp.minimum(jax.lax.rsqrt(sumsq), 1.0 / NORM_EPS)     # == 1 / max(norm, eps)
    o_ref[0] = (z * inv).astype(o_ref.dtype)


def _round_up(a, m):
    return (a + m - 1) // m * m


def projection_head(x_nchw, params, *, max_tile_hw=2048):
    """x_nchw: (N, C_in, H, W) float32. Returns (N, proj_dim, H, W) float32."""
    w1, b1, gamma, beta, mean, var, w2, b2 = params
    N, C_in, H, W = x_nchw.shape
    proj_dim = w2.shape[0]
    HW = H * W

    # --- Fold eval-mode BN into conv1 (one-time host-side precompute) ---
    scale = gamma * jax.lax.rsqrt(var + BN_EPS)                 # (C_in,)
    w1f = w1 * scale[:, None]                                   # per-output-channel scale
    b1f = (b1 - mean) * scale + beta

    # --- Channel-major layout, no transposes: (N, C_in, H*W) ---
    x3 = x_nchw.reshape(N, C_in, HW)

    # --- Spatial tiling: lane-dense, large, and balanced to minimize padding ---
    HW_128 = _round_up(HW, 128)
    if HW_128 <= max_tile_hw:
        tile_hw = HW_128
    else:
        num_tiles = pl.cdiv(HW_128, max_tile_hw)
        tile_hw = _round_up(pl.cdiv(HW_128, num_tiles), 128)
    HW_pad = _round_up(HW, tile_hw)
    if HW_pad != HW:
        # Padded pixels are independent (pure per-pixel op); sliced off below.
        x3 = jnp.pad(x3, ((0, 0), (0, 0), (0, HW_pad - HW)))

    col = lambda v: v.reshape(-1, 1)                            # vectors as (C, 1)

    grid = (N, HW_pad // tile_hw)
    # Weight/bias blocks are grid-invariant; at these channel counts their
    # double buffers are negligible next to the activation tiles.
    grid_spec = pltpu.PrefetchScalarGridSpec(
        num_scalar_prefetch=0,
        grid=grid,
        in_specs=[
            pl.BlockSpec((1, C_in, tile_hw), lambda n, j: (n, 0, j)),   # x tile
            pl.BlockSpec((C_in, C_in), lambda n, j: (0, 0)),            # w1 (BN folded)
            pl.BlockSpec((C_in, 1), lambda n, j: (0, 0)),               # b1 (folded)
            pl.BlockSpec((proj_dim, C_in), lambda n, j: (0, 0)),        # w2
            pl.BlockSpec((proj_dim, 1), lambda n, j: (0, 0)),           # b2
        ],
        out_specs=pl.BlockSpec((1, proj_dim, tile_hw), lambda n, j: (n, 0, j)),
    )

    out = pl.pallas_call(
        proj_head_kernel,
        out_shape=jax.ShapeDtypeStruct((N, proj_dim, HW_pad), jnp.float32),
        grid_spec=grid_spec,
        compiler_params=pltpu.CompilerParams(
            dimension_semantics=("parallel", "parallel"),
            vmem_limit_bytes=32 * 1024 * 1024,   # safe on v5e/v6e/v7x; tiles are ~MiB-scale
        ),
    )(x3, w1f, col(b1f), w2, col(b2))

    if HW_pad != HW:
        out = out[:, :, :HW]                                    # strip spatial padding
    return out.reshape(N, proj_dim, H, W)                       # already NCHW


def init_params(key, dim_in, proj_dim):
    ks = jax.random.split(key, 8)
    w1 = jax.random.normal(ks[0], (dim_in, dim_in), jnp.float32) * 0.1
    b1 = jax.random.normal(ks[1], (dim_in,), jnp.float32) * 0.05
    gamma = 1.0 + 0.1 * jax.random.normal(ks[2], (dim_in,), jnp.float32)
    beta = 0.05 * jax.random.normal(ks[3], (dim_in,), jnp.float32)
    mean = 0.1 * jax.random.normal(ks[4], (dim_in,), jnp.float32)
    var = jnp.abs(1.0 + 0.1 * jax.random.normal(ks[5], (dim_in,), jnp.float32))
    w2 = jax.random.normal(ks[6], (proj_dim, dim_in), jnp.float32) * 0.1
    b2 = jax.random.normal(ks[7], (proj_dim,), jnp.float32) * 0.05
    return (w1, b1, gamma, beta, mean, var, w2, b2)


def reference_forward(x_nchw, params):
    """Plain-JAX reference of the PyTorch forward (BN in eval mode, unfolded)."""
    w1, b1, gamma, beta, mean, var, w2, b2 = params
    x = jnp.transpose(x_nchw, (0, 2, 3, 1))                     # NHWC
    y = jnp.einsum('nhwc,oc->nhwo', x, w1) + b1
    y = (y - mean) / jnp.sqrt(var + BN_EPS) * gamma + beta
    y = jnp.maximum(y, 0.0)
    z = jnp.einsum('nhwc,oc->nhwo', y, w2) + b2
    n = jnp.sqrt(jnp.sum(z * z, axis=-1, keepdims=True))
    z = z / jnp.maximum(n, NORM_EPS)
    return jnp.transpose(z, (0, 3, 1, 2))                       # NCHW


if __name__ == "__main__":
    # Small shapes consistent with the module: N=2, dim_in=32, H=W=16, proj_dim=64
    N, C_IN, H, W = 2, 32, 16, 16
    PROJ_DIM = 64

    key = jax.random.PRNGKey(0)
    kx, kp = jax.random.split(key)
    x = jax.random.normal(kx, (N, C_IN, H, W), jnp.float32)
    params = init_params(kp, C_IN, PROJ_DIM)

    out = projection_head(x, params)
    out = jax.block_until_ready(out)

    ref = reference_forward(x, params)
    assert out.shape == (N, PROJ_DIM, H, W)
    assert jnp.allclose(out, ref, atol=2e-5, rtol=1e-5), "mismatch vs reference"

    print("KERNEL_OK")
</pallas_src>

<mosaic_0001>
module attributes {stable_mosaic.version = 11 : i64} {
  func.func @proj_head_kernel(%arg0: i32, %arg1: i32, %arg2: memref<1x32x256xf32, #tpu.memory_space<vmem>>, %arg3: memref<32x32xf32, #tpu.memory_space<vmem>>, %arg4: memref<32x1xf32, #tpu.memory_space<vmem>>, %arg5: memref<64x32xf32, #tpu.memory_space<vmem>>, %arg6: memref<64x1xf32, #tpu.memory_space<vmem>>, %arg7: memref<1x64x256xf32, #tpu.memory_space<vmem>>) attributes {dimension_semantics = [#tpu.dimension_semantics<parallel>, #tpu.dimension_semantics<parallel>], iteration_bounds = array<i64: 2, 1>, scalar_prefetch = 0 : i64, scratch_operands = 0 : i64, tpu.core_type = #tpu.core_type<tc>, window_params = [{transform_indices = @transform_0, window_bounds = array<i64: 1, 32, 256>}, {pipeline_mode = #tpu.pipeline_mode<synchronous>, transform_indices = @transform_1, window_bounds = array<i64: 32, 32>}, {pipeline_mode = #tpu.pipeline_mode<synchronous>, transform_indices = @transform_2, window_bounds = array<i64: 32, 1>}, {pipeline_mode = #tpu.pipeline_mode<synchronous>, transform_indices = @transform_3, window_bounds = array<i64: 64, 32>}, {pipeline_mode = #tpu.pipeline_mode<synchronous>, transform_indices = @transform_4, window_bounds = array<i64: 64, 1>}, {transform_indices = @transform_5, window_bounds = array<i64: 1, 64, 256>}]} {
    %c0 = arith.constant 0 : index
    %c0_0 = arith.constant 0 : index
    %c0_1 = arith.constant 0 : index
    %0 = vector.load %arg2[%c0, %c0_0, %c0_1] : memref<1x32x256xf32, #tpu.memory_space<vmem>>, vector<1x32x256xf32>
    %1 = vector.shape_cast %0 : vector<1x32x256xf32> to vector<32x256xf32>
    %c0_2 = arith.constant 0 : index
    %c0_3 = arith.constant 0 : index
    %2 = vector.load %arg3[%c0_2, %c0_3] : memref<32x32xf32, #tpu.memory_space<vmem>>, vector<32x32xf32>
    %cst = arith.constant dense<0.000000e+00> : vector<32x256xf32>
    %3 = tpu.matmul %2, %1, %cst {dimension_numbers = #tpu.dot_dimension_numbers<[1], [0], [0], [1], [0, 0, 1, 1], [], []>} : vector<32x32xf32>, vector<32x256xf32>, vector<32x256xf32> -> vector<32x256xf32>
    %c0_4 = arith.constant 0 : index
    %c0_5 = arith.constant 0 : index
    %4 = vector.load %arg4[%c0_4, %c0_5] : memref<32x1xf32, #tpu.memory_space<vmem>>, vector<32x1xf32>
    %5 = vector.broadcast %4 : vector<32x1xf32> to vector<32x256xf32>
    %6 = arith.addf %3, %5 : vector<32x256xf32>
    %cst_6 = arith.constant 0.000000e+00 : f32
    %7 = vector.broadcast %cst_6 : f32 to vector<32x256xf32>
    %8 = arith.maximumf %6, %7 : vector<32x256xf32>
    %c0_7 = arith.constant 0 : index
    %c0_8 = arith.constant 0 : index
    %9 = vector.load %arg5[%c0_7, %c0_8] : memref<64x32xf32, #tpu.memory_space<vmem>>, vector<64x32xf32>
    %cst_9 = arith.constant dense<0.000000e+00> : vector<64x256xf32>
    %10 = tpu.matmul %9, %8, %cst_9 {dimension_numbers = #tpu.dot_dimension_numbers<[1], [0], [0], [1], [0, 0, 1, 1], [], []>} : vector<64x32xf32>, vector<32x256xf32>, vector<64x256xf32> -> vector<64x256xf32>
    %c0_10 = arith.constant 0 : index
    %c0_11 = arith.constant 0 : index
    %11 = vector.load %arg6[%c0_10, %c0_11] : memref<64x1xf32, #tpu.memory_space<vmem>>, vector<64x1xf32>
    %12 = vector.broadcast %11 : vector<64x1xf32> to vector<64x256xf32>
    %13 = arith.addf %10, %12 : vector<64x256xf32>
    %14 = arith.mulf %13, %13 : vector<64x256xf32>
    %cst_12 = arith.constant dense<0.000000e+00> : vector<256xf32>
    %15 = vector.multi_reduction <add>, %14, %cst_12 [0] : vector<64x256xf32> to vector<256xf32>
    %16 = vector.shape_cast %15 : vector<256xf32> to vector<1x256xf32>
    %17 = math.rsqrt %16 : vector<1x256xf32>
    %cst_13 = arith.constant 9.99999995E+11 : f32
    %18 = vector.broadcast %cst_13 : f32 to vector<1x256xf32>
    %19 = arith.minimumf %17, %18 : vector<1x256xf32>
    %20 = vector.broadcast %19 : vector<1x256xf32> to vector<64x256xf32>
    %21 = arith.mulf %13, %20 : vector<64x256xf32>
    %c0_14 = arith.constant 0 : index
    %c0_15 = arith.constant 0 : index
    %c0_16 = arith.constant 0 : index
    %22 = vector.load %arg7[%c0_14, %c0_15, %c0_16] : memref<1x64x256xf32, #tpu.memory_space<vmem>>, vector<1x64x256xf32>
    %23 = vector.shape_cast %22 : vector<1x64x256xf32> to vector<64x256xf32>
    %24 = vector.shape_cast %21 : vector<64x256xf32> to vector<1x64x256xf32>
    tpu.vector_store %arg7[%c0_14, %c0_15, %c0_16], %24 {strides = array<i32>} : memref<1x64x256xf32, #tpu.memory_space<vmem>>, vector<1x64x256xf32>,
    return
  }
  func.func @transform_0(%arg0: i32, %arg1: i32) -> (i32, i32, i32) {
    %c0_i32 = arith.constant 0 : i32
    %c0_i32_0 = arith.constant 0 : i32
    return %arg0, %c0_i32, %arg1 : i32, i32, i32
  }
  func.func @transform_1(%arg0: i32, %arg1: i32) -> (i32, i32) {
    %c0_i32 = arith.constant 0 : i32
    %c0_i32_0 = arith.constant 0 : i32
    %c0_i32_1 = arith.constant 0 : i32
    return %c0_i32, %c0_i32_0 : i32, i32
  }
  func.func @transform_2(%arg0: i32, %arg1: i32) -> (i32, i32) {
    %c0_i32 = arith.constant 0 : i32
    %c0_i32_0 = arith.constant 0 : i32
    %c0_i32_1 = arith.constant 0 : i32
    return %c0_i32, %c0_i32_0 : i32, i32
  }
  func.func @transform_3(%arg0: i32, %arg1: i32) -> (i32, i32) {
    %c0_i32 = arith.constant 0 : i32
    %c0_i32_0 = arith.constant 0 : i32
    %c0_i32_1 = arith.constant 0 : i32
    return %c0_i32, %c0_i32_0 : i32, i32
  }
  func.func @transform_4(%arg0: i32, %arg1: i32) -> (i32, i32) {
    %c0_i32 = arith.constant 0 : i32
    %c0_i32_0 = arith.constant 0 : i32
    %c0_i32_1 = arith.constant 0 : i32
    return %c0_i32, %c0_i32_0 : i32, i32
  }
  func.func @transform_5(%arg0: i32, %arg1: i32) -> (i32, i32, i32) {
    %c0_i32 = arith.constant 0 : i32
    %c0_i32_0 = arith.constant 0 : i32
    return %arg0, %c0_i32, %arg1 : i32, i32, i32
  }
}

</mosaic_0001>

<bundles_post_ra>
// kernel: tpu_custom_call.1
= control target key start
LH: loop header
LB: loop body
LE: loop exit
PB: predicated region body
PF: predicated region fallthrough
CT: control target
= control target key end

     0   :  { %10 = vsyncpa [#allocation3], 0  ;;  %s1282_s0 = inlined_call_operand.vmem [shape: f32[2,32,256], index: 0, kind: input, shape index: {}]   ;;  %s1283_s1 = inlined_call_operand.vmem [shape: f32[32,32], index: 1, kind: input, shape index: {}]   ;;  %s1284_s2 = inlined_call_operand.vmem [shape: f32[32,1], index: 2, kind: input, shape index: {}]   ;;  %s1285_s3 = inlined_call_operand.vmem [shape: f32[64,32], index: 3, kind: input, shape index: {}]   ;;  %s1286_s4 = inlined_call_operand.vmem [shape: f32[64,1], index: 4, kind: input, shape index: {}]   ;;  %s1287_s5 = inlined_call_operand.hbm [shape: f32[2,64,256], index: 5, kind: output, shape index: {}]  }
   0x1   :  { %12 = vsyncpa [#allocation3 + $0x1], 0  ;;  %s993_s18 = smov 0   ;;  %s995_s19 = smov 0  }
   0x2   :  { %s997_s20 = smov 0   ;;  %s999_s21 = smov 0  }
   0x3   :  { %s1001_s22 = smov 0   ;;  %s1003_s23 = smov 0  }
   0x4 LB: > { %s766_s24 = sadd.s32 4294967295, %s956_s23   ;;  %s767_s25 = sadd.s32 4294967294, %s956_s23   ;;  %s956_s23 = sphi %s1003_s23, %s18_s23   ;;  %s952_s22 = sphi %s1001_s22, %s1294_s22   ;;  %s948_s21 = sphi %s999_s21, %s1293_s21   ;;  %s944_s20 = sphi %s997_s20, %s1292_s20   ;;  %s940_s19 = sphi %s995_s19, %s1291_s19   ;;  %s936_s18 = sphi %s993_s18, %s1290_s18  }
   0x5   : > { %s30_s26 = sadd.s32 1, %s952_s22  ;;  %s151_s27 = sadd.s32 1, %s944_s20 }
   0x6   : > { %p32_p0 = scmp.ge.s32.totalorder %s30_s26, 2  ;;  %p161_p1 = scmp.ne.s32.totalorder %s944_s20, %s940_s19 }
   0x7   : > { %p162_p2 = scmp.eq.s32.totalorder %s766_s24, 1  ;;  %p167_p3 = scmp.ne.s32.totalorder %s940_s19, %s936_s18 }
   0x8   : > { %s1296_s26 = smov (%p32_p0, %s30_s26), 0  ;;  %p168_p5 = scmp.eq.s32.totalorder %s767_s25, 1 }
   0x9   : > { %p1033_p4 = por %p162_p2, %p161_p1  ;;  %s146_s29 = ssub.s32 %s952_s22, %s1296_s26 }
   0xa   : > { %p770_p6 = scmp.ge.s32.totalorder %s956_s23, 1  ;;  %p149_p7 = scmp.eq.s32.totalorder %s146_s29, 0 }
   0xb   : > { %p1040_p8 = por %p168_p5, %p167_p3  ;;  %p211_p9 = scmp.lt.s32.totalorder %s956_s23, 3 }
   0xc   : > { %s1046_s6 = scalar_select %p149_p7, %s944_s20, %s151_s27  }
   0xd   : > { %p212_p10 = pnand %p770_p6, %p211_p9 }
   0xe   : > { %p244_p11 = scmp.lt.s32.totalorder (!%p212_p10), %s948_s21, 1  ;;  %v958_v0 = vmov (!%p212_p10), 0.0   ;;  %v266_v1 = vld [vmem:[%s1284_s2] sm:$0xff] (!%p212_p10)  ;;  %v959_v2 = vmov (!%p212_p10), 0   ;;  %v268_v3 = vld [vmem:[%s1284_s2 + $0x10] sm:$0xff] (!%p212_p10)  ;;  %v267_v4 = vld [vmem:[%s1284_s2 + $0x8] sm:$0xff] (!%p212_p10) }
   0xf   : > { %215 = sbr.rel (%p212_p10) target bundleno = 559 (0x22f), region = 40  ;;  %367 = vmatprep.mubr.f32.mxu0 (!%p212_p10), %v958_v0  ;;  %556 = vmatprep.mubr.f32.mxu1 (!%p212_p10), %v958_v0  ;;  %v269_v5 = vld [vmem:[%s1284_s2 + $0x18] sm:$0xff] (!%p212_p10)  ;;  %v408_v17 = vld [vmem:[%s1286_s4] sm:$0xff] (!%p212_p10)  ;;  %v409_v18 = vld [vmem:[%s1286_s4 + $0x8] sm:$0xff] (!%p212_p10)  ;;  %vm290_vm0 = vcmask (!%p212_p10), 261120   ;;  %s240_s15 = sand.u32 (!%p212_p10), 1, %s940_s19  }
  0x10   : > { %872 = vset.pattern.permute.xlu0 (!%p212_p10), %v959_v2  ;;  %873 = vset.pattern.permute.xlu1 (!%p212_p10), %v959_v2  ;;  %v410_v20 = vld [vmem:[%s1286_s4 + $0x10] sm:$0xff] (!%p212_p10)  ;;  %v411_v21 = vld [vmem:[%s1286_s4 + $0x18] sm:$0xff] (!%p212_p10)  ;;  %v262_v22 = vld [vmem:[%s1283_s1] sm:$0xff] (!%p212_p10)  ;;  %s771_s16 = sshll.u32 (!%p212_p10), %s240_s15, 7  ;;  %s792_s17 = sshll.u32 (!%p212_p10), %s948_s21, 11 }
  0x11   : > { %272 = vperm.xlu0 (!%p212_p10), %872, %v266_v1   ;;  %282 = vperm.xlu1 (!%p212_p10), %873, %v268_v3   ;;  %v412_v23 = vld [vmem:[%s1286_s4 + $0x20] sm:$0xff] (!%p212_p10)  ;;  %v413_v24 = vld [vmem:[%s1286_s4 + $0x28] sm:$0xff] (!%p212_p10)  ;;  %v414_v26 = vld [vmem:[%s1286_s4 + $0x30] sm:$0xff] (!%p212_p10)  ;;  %s1197_s24 = scalar_lea.vmem (!%p212_p10), [#allocation2], %s771_s16  ;;  %s1216_s29 = scalar_lea.hbm (!%p212_p10), %s1287_s5, %s792_s17 }
  0x12   : > { %v263_v25 = vld [vmem:[%s1283_s1 + $0x8] sm:$0xff] (!%p212_p10)  ;;  %v415_v27 = vld [vmem:[%s1286_s4 + $0x38] sm:$0xff] (!%p212_p10)  ;;  %v264_v28 = vld [vmem:[%s1283_s1 + $0x10] sm:$0xff] (!%p212_p10)  ;;  %s1236_s7 = scalar_lea.sflag (!%p212_p10), [#allocation3], %s240_s15 }
  0x13   : > { %v265_v29 = vld [vmem:[%s1283_s1 + $0x18] sm:$0xff] (!%p212_p10)  ;;  %v400_v62 = vld [vmem:[%s1285_s3] sm:$0xff] (!%p212_p10)  ;;  %v402_v63 = vld [vmem:[%s1285_s3 + $0x10] sm:$0xff] (!%p212_p10) }
  0x14   : > { %v401_v1 = vld [vmem:[%s1285_s3 + $0x8] sm:$0xff] (!%p212_p10)  ;;  %v403_v2 = vld [vmem:[%s1285_s3 + $0x18] sm:$0xff] (!%p212_p10)  ;;  %v404_v3 = vld [vmem:[%s1285_s3 + $0x20] sm:$0xff] (!%p212_p10) }
  0x15   : > { %277 = vperm.xlu0 (!%p212_p10), %872, %v267_v4   ;;  %287 = vperm.xlu1 (!%p212_p10), %873, %v269_v5   ;;  %v405_v4 = vld [vmem:[%s1285_s3 + $0x28] sm:$0xff] (!%p212_p10)  ;;  %v406_v5 = vld [vmem:[%s1285_s3 + $0x30] sm:$0xff] (!%p212_p10) }
  0x16   : > { %s245_s9 = scalar_select %p244_p11, %s948_s21, 1 }
  0x18   : > { %s791_s12 = sshll.u32 %s245_s9, 6  ;;  %s960_s9 = smov [#allocation2]  }
  0x19   : > { %s251_s25 = scalar_lea.vmem %s1282_s0, %s791_s12  ;;  %418 = vperm.xlu0 %872, %v408_v17   ;;  %423 = vperm.xlu1 %873, %v409_v18   ;;  %s882_s10 = sshll.u32 %s960_s9, 4  ;;  %s883_s10 = int_to_ptr.vmem [resolvable:$false] %s882_s10 }
  0x1a   : > { %v255_v6 = vld [vmem:[%s251_s25 + $0x8] sm:$0xff]  ;;  %v257_v7 = vld [vmem:[%s251_s25 + $0x18] sm:$0xff]  ;;  %v254_v8 = vld [vmem:[%s251_s25] sm:$0xff]  ;;  %s884_s11 = scalar_lea.vmem %s883_s10, 4096 }
  0x1b   : > { %v793_v9 = vpack.c.bf16 %v257_v7, %v255_v6  ;;  %v256_v10 = vld [vmem:[%s251_s25 + $0x10] sm:$0xff]  ;;  %v259_v11 = vld [vmem:[%s251_s25 + $0x28] sm:$0xff]  ;;  %v261_v12 = vld [vmem:[%s251_s25 + $0x38] sm:$0xff] }
  0x1c   : > { %v795_v13 = vpack.c.bf16 %v256_v10, %v254_v8  ;;  %v797_v14 = vpack.c.bf16 %v261_v12, %v259_v11  ;;  %v258_v15 = vld [vmem:[%s251_s25 + $0x20] sm:$0xff]  ;;  %v260_v16 = vld [vmem:[%s251_s25 + $0x30] sm:$0xff]  ;;  %v407_v6 = vld [vmem:[%s1285_s3 + $0x38] sm:$0xff]  ;;  %s687_s25 = sshll.u32 %s1197_s24, 4  ;;  %s1218_s25 = int_to_ptr.vmem [resolvable:$true] %s687_s25 }
  0x1d   : > { %794 = vmatprep.subr.bf16.mxu0 %v793_v9  ;;  %v799_v19 = vpack.c.bf16 %v260_v16, %v258_v15  ;;  %428 = vperm.xlu0 %872, %v410_v20   ;;  %s878_s8 = scalar_lea.vmem %s1218_s25, 2048  ;;  %p885_p1 = scmp.lt.s32.totalorder %s1218_s25, %s883_s10 }
  0x1e   : > { %796 = vmatpush1.bf16.msra.mxu0 %v795_v13  ;;  %433 = vperm.xlu1 %873, %v411_v21   ;;  %p879_p12 = scmp.ne.s32.totalorder %s1218_s25, %s878_s8  ;;  %p886_p2 = scmp.lt.s32.totalorder %s884_s11, %s878_s8 }
  0x1f   : > { %798 = vmatprep.subr.bf16.mxu0 %v797_v14 }
  0x20   : > { %p880_p13 = pnand %p879_p12, %p1033_p4  ;;  %p887_p3 = por %p886_p2, %p885_p1 }
  0x21   : > { %438 = vperm.xlu0 %872, %v412_v23  }
  0x22   : > { %800 = vmatpush1.bf16.msra.mxu0 %v799_v19  ;;  %443 = vperm.xlu1 %873, %v413_v24   ;;  %p881_p0 = pneg %p880_p13 }
  0x24   : > { %p888_p5 = pnand %p887_p3, %p881_p0 }
  0x25   : > { %774 = vmatmul.mubr.msk.f32.vlgmr.msra.gmra.mrb[0].mxu0 %vm290_vm0, %v262_v22  ;;  %448 = vperm.xlu0 %872, %v414_v26  }
  0x26   : > { %373 = vmatprep.mubr.f32.mxu0 %v958_v0  ;;  %453 = vperm.xlu1 %873, %v415_v27  }
  0x29   : > { %775 = vmatmul.mubr.msk.f32.gmra.mrb[2].mxu0 %vm290_vm0, %v263_v25 }
  0x2a   : > { %379 = vmatprep.mubr.f32.mxu0 %v958_v0 }
  0x2d   : > { %776 = vmatmul.mubr.msk.f32.gmra.mrb[4].mxu0 %vm290_vm0, %v264_v28 }
  0x2e   : > { %385 = vmatprep.mubr.f32.mxu0 %v958_v0 }
  0x31   : > { %777 = vmatmul.mubr.msk.f32.gmra.mrb[6].mxu0 %vm290_vm0, %v265_v29 }
  0x32   : > { %544 = vmatprep.mubr.f32.mxu0 %v958_v0 }
  0x90   : > { %v273_v30 = vpop.permute.xlu0 %272  ;;  %v283_v39 = vpop.permute.xlu1 %282 }
  0x94   : > { %v278_v34 = vpop.permute.xlu0 %277  ;;  %v288_v50 = vpop.permute.xlu1 %287 }
  0x98   : > { %v419_v7 = vpop.permute.xlu0 %418  ;;  %v424_v8 = vpop.permute.xlu1 %423 }
  0x9c   : > { %v429_v13 = vpop.permute.xlu0 %428 }
  0x9d   : > { %v434_v21 = vpop.permute.xlu1 %433 }
  0xa0   : > { %v439_v27 = vpop.permute.xlu0 %438 }
  0xf8   : > { %v369_v31 = vpop.f32.mrb[0].mxu0 }
  0xf9   : > { %v371_v32 = vpop.f32.mrb[1].mxu0  ;;  %v370_v33 = vadd.f32 %v369_v31, %v273_v30 }
  0xfa   : > { %v372_v35 = vadd.f32 %v371_v32, %v273_v30 }
  0xfb   : > { %v392_v41 = vmax.f32 %v370_v33, 0.0 }
  0xfc   : > { %v375_v36 = vpop.f32.mrb[2].mxu0  ;;  %v393_v43 = vmax.f32 %v372_v35, 0.0 }
  0xfd   : > { %v376_v37 = vadd.f32 %v375_v36, %v278_v34  ;;  %v377_v38 = vpop.f32.mrb[3].mxu0 }
  0xfe   : > { %v378_v40 = vadd.f32 %v377_v38, %v278_v34 }
  0xff   : > { %v394_v42 = vmax.f32 %v376_v37, 0.0 }
 0x100   : > { %v395_v44 = vmax.f32 %v378_v40, 0.0  ;;  %v381_v45 = vpop.f32.mrb[4].mxu0 }
 0x101   : > { %v803_v46 = vpack.c.bf16 %v394_v42, %v392_v41  ;;  %v383_v47 = vpop.f32.mrb[5].mxu0  ;;  %v382_v49 = vadd.f32 %v381_v45, %v283_v39  ;;  %v444_v41 = vpop.permute.xlu1 %443 }
 0x102   : > { %v801_v48 = vpack.c.bf16 %v395_v44, %v393_v43  ;;  %v384_v51 = vadd.f32 %v383_v47, %v283_v39 }
 0x103   : > { %v396_v56 = vmax.f32 %v382_v49, 0.0 }
 0x104   : > { %v387_v52 = vpop.f32.mrb[6].mxu0  ;;  %802 = vmatprep.subr.bf16.mxu0 %v801_v48  ;;  %809 = vmatprep.subr.bf16.mxu1 %v801_v48  ;;  %v397_v58 = vmax.f32 %v384_v51, 0.0 }
 0x105   : > { %v388_v53 = vadd.f32 %v387_v52, %v288_v50  ;;  %v389_v54 = vpop.f32.mrb[7].mxu0  ;;  %804 = vmatpush1.bf16.msra.mxu0 %v803_v46  ;;  %811 = vmatpush1.bf16.msra.mxu1 %v803_v46 }
 0x106   : > { %v390_v55 = vadd.f32 %v389_v54, %v288_v50  ;;  %v449_v54 = vpop.permute.xlu0 %448 }
 0x107   : > { %v398_v57 = vmax.f32 %v388_v53, 0.0 }
 0x108   : > { %v399_v59 = vmax.f32 %v390_v55, 0.0 }
 0x109   : > { %v807_v60 = vpack.c.bf16 %v398_v57, %v396_v56 }
 0x10a   : > { %v805_v61 = vpack.c.bf16 %v399_v59, %v397_v58 }
 0x10c   : > { %806 = vmatprep.subr.bf16.mxu0 %v805_v61  ;;  %810 = vmatprep.subr.bf16.mxu1 %v805_v61 }
 0x10d   : > { %808 = vmatpush1.bf16.msra.mxu0 %v807_v60  ;;  %812 = vmatpush1.bf16.msra.mxu1 %v807_v60 }
 0x110   : > { %778 = vmatmul.mubr.msk.f32.vlgmr.msra.gmra.mrb[8].mxu0 %vm290_vm0, %v400_v62  ;;  %780 = vmatmul.mubr.msk.f32.vlgmr.msra.gmra.mrb[0].mxu1 %vm290_vm0, %v402_v63 }
 0x111   : > { %550 = vmatprep.mubr.f32.mxu0 %v958_v0  ;;  %562 = vmatprep.mubr.f32.mxu1 %v958_v0 }
 0x114   : > { %779 = vmatmul.mubr.msk.f32.gmra.mrb[10].mxu0 %vm290_vm0, %v401_v1  ;;  %781 = vmatmul.mubr.msk.f32.gmra.mrb[2].mxu1 %vm290_vm0, %v403_v2  ;;  %v454_v1 = vpop.permute.xlu1 %453 }
 0x115   : > { %568 = vmatprep.mubr.f32.mxu1 %v958_v0 }
 0x118   : > { %782 = vmatmul.mubr.msk.f32.gmra.mrb[4].mxu1 %vm290_vm0, %v404_v3 }
 0x119   : > { %574 = vmatprep.mubr.f32.mxu1 %v958_v0 }
 0x11c   : > { %783 = vmatmul.mubr.msk.f32.gmra.mrb[6].mxu1 %vm290_vm0, %v405_v4 }
 0x11d   : > { %580 = vmatprep.mubr.f32.mxu1 %v958_v0 }
 0x120   : > { %784 = vmatmul.mubr.msk.f32.gmra.mrb[8].mxu1 %vm290_vm0, %v406_v5 }
 0x121   : > { %586 = vmatprep.mubr.f32.mxu1 %v958_v0 }
 0x124   : > { %785 = vmatmul.mubr.msk.f32.gmra.mrb[10].mxu1 %vm290_vm0, %v407_v6 }
 0x1e3   : > { %v546_v9 = vpop.f32.mrb[8].mxu0  ;;  %v558_v10 = vpop.f32.mrb[0].mxu1 }
 0x1e4   : > { %v548_v11 = vpop.f32.mrb[9].mxu0  ;;  %v560_v12 = vpop.f32.mrb[1].mxu1  ;;  %v1149_v14 = vadd.f32 %v546_v9, %v419_v7  ;;  %v1153_v0 = vadd.f32 %v558_v10, %v429_v13 }
 0x1e5   : > { %v1151_v15 = vadd.f32 %v548_v11, %v419_v7  ;;  %v1157_v22 = vadd.f32 %v560_v12, %v429_v13 }
 0x1e6   : > { %v593_v24 = vmul.f32 %v1149_v14, %v1149_v14  ;;  %v597_v32 = vmul.f32 %v1153_v0, %v1153_v0 }
 0x1e7   : > { %v552_v16 = vpop.f32.mrb[10].mxu0  ;;  %v564_v17 = vpop.f32.mrb[2].mxu1  ;;  %v594_v28 = vmul.f32 %v1151_v15, %v1151_v15  ;;  %v598_v36 = vmul.f32 %v1157_v22, %v1157_v22 }
 0x1e8   : > { %v1155_v18 = vadd.f32 %v552_v16, %v424_v8  ;;  %v554_v19 = vpop.f32.mrb[11].mxu0  ;;  %v566_v20 = vpop.f32.mrb[3].mxu1  ;;  %v1165_v26 = vadd.f32 %v564_v17, %v434_v21 }
 0x1e9   : > { %v1159_v23 = vadd.f32 %v554_v19, %v424_v8  ;;  %v1171_v30 = vadd.f32 %v566_v20, %v434_v21 }
 0x1ea   : > { %v595_v25 = vmul.f32 %v1155_v18, %v1155_v18  ;;  %v599_v39 = vmul.f32 %v1165_v26, %v1165_v26 }
 0x1eb   : > { %v596_v29 = vmul.f32 %v1159_v23, %v1159_v23  ;;  %v570_v31 = vpop.f32.mrb[4].mxu1  ;;  %v600_v42 = vmul.f32 %v1171_v30, %v1171_v30 }
 0x1ec   : > { %v609_v33 = vadd.f32 %v595_v25, %v593_v24  ;;  %v1175_v34 = vadd.f32 %v570_v31, %v439_v27  ;;  %v572_v35 = vpop.f32.mrb[5].mxu1 }
 0x1ed   : > { %v622_v37 = vadd.f32 %v596_v29, %v594_v28  ;;  %v1179_v38 = vadd.f32 %v572_v35, %v439_v27 }
 0x1ee   : > { %v610_v40 = vadd.f32 %v609_v33, %v597_v32  ;;  %v601_v46 = vmul.f32 %v1175_v34, %v1175_v34 }
 0x1ef   : > { %v623_v43 = vadd.f32 %v622_v37, %v598_v36  ;;  %v576_v44 = vpop.f32.mrb[6].mxu1  ;;  %v602_v50 = vmul.f32 %v1179_v38, %v1179_v38 }
 0x1f0   : > { %v611_v45 = vadd.f32 %v610_v40, %v599_v39  ;;  %v577_v47 = vadd.f32 %v576_v44, %v444_v41  ;;  %v578_v48 = vpop.f32.mrb[7].mxu1 }
 0x1f1   : > { %v624_v49 = vadd.f32 %v623_v43, %v600_v42  ;;  %v1189_v51 = vadd.f32 %v578_v48, %v444_v41 }
 0x1f2   : > { %v612_v52 = vadd.f32 %v611_v45, %v601_v46  ;;  %v603_v53 = vmul.f32 %v577_v47, %v577_v47 }
 0x1f3   : > { %v625_v55 = vadd.f32 %v624_v49, %v602_v50  ;;  %v604_v56 = vmul.f32 %v1189_v51, %v1189_v51  ;;  %v582_v57 = vpop.f32.mrb[8].mxu1 }
 0x1f4   : > { %v613_v58 = vadd.f32 %v612_v52, %v603_v53  ;;  %v583_v59 = vadd.f32 %v582_v57, %v449_v54  ;;  %v584_v60 = vpop.f32.mrb[9].mxu1 }
 0x1f5   : > { %v626_v61 = vadd.f32 %v625_v55, %v604_v56  ;;  %v585_v62 = vadd.f32 %v584_v60, %v449_v54 }
 0x1f6   : > { %v605_v63 = vmul.f32 %v583_v59, %v583_v59 }
 0x1f7   : > { %v606_v2 = vmul.f32 %v585_v62, %v585_v62  ;;  %v588_v3 = vpop.f32.mrb[10].mxu1 }
 0x1f8   : > { %v614_v4 = vadd.f32 %v613_v58, %v605_v63  ;;  %v589_v5 = vadd.f32 %v588_v3, %v454_v1  ;;  %v590_v6 = vpop.f32.mrb[11].mxu1 }
 0x1f9   : > { %v627_v7 = vadd.f32 %v626_v61, %v606_v2  ;;  %v591_v8 = vadd.f32 %v590_v6, %v454_v1 }
 0x1fa   : > { %v607_v9 = vmul.f32 %v589_v5, %v589_v5 }
 0x1fb   : > { %v608_v10 = vmul.f32 %v591_v8, %v591_v8 }
 0x1fc   : > { %v615_v11 = vadd.f32 %v614_v4, %v607_v9 }
 0x1fd   : > { %v628_v12 = vadd.f32 %v627_v7, %v608_v10 }
 0x1fe   : > { %v616_v13 = vrot.slane %v615_v11, 4 }
 0x1ff   : > { %v629_v16 = vrot.slane %v628_v12, 4 }
 0x200   : > { %v617_v17 = vadd.f32 %v616_v13, %v615_v11 }
 0x201   : > { %v630_v19 = vadd.f32 %v629_v16, %v628_v12 }
 0x202   : > { %v618_v20 = vrot.slane %v617_v17, 2 }
 0x203   : > { %v631_v21 = vrot.slane %v630_v19, 2 }
 0x204   : > { %v619_v24 = vadd.f32 %v618_v20, %v617_v17 }
 0x205   : > { %v632_v25 = vadd.f32 %v631_v21, %v630_v19 }
 0x206   : > { %v620_v27 = vrot.slane %v619_v24, 1 }
 0x207   : > { %v633_v28 = vrot.slane %v632_v25, 1 }
 0x208   : > { %v621_v29 = vadd.f32 %v620_v27, %v619_v24 }
 0x209   : > { %v634_v31 = vadd.f32 %v633_v28, %v632_v25 }
 0x20a   : > { %874 = vrsqrt.f32 %v621_v29 }
 0x20b   : > { %876 = vrsqrt.f32 %v634_v31 }
 0x214   : > { %v875_v32 = vpop.eup %874 }
 0x215   : > { %v877_v33 = vpop.eup %876  ;;  %v637_v35 = vmin.f32 %v875_v32, 1e+12 }
 0x216   : > { %v638_v36 = vmin.f32 %v877_v33, 1e+12 }
 0x217   : > { %v639_v37 = vmul.f32 %v637_v35, %v1149_v14  ;;  %v641_v39 = vmul.f32 %v637_v35, %v1155_v18  ;;  %v643_v40 = vmul.f32 %v637_v35, %v1153_v0  ;;  %v645_v41 = vmul.f32 %v637_v35, %v1165_v26 }
 0x218   : > { %v647_v42 = vmul.f32 %v637_v35, %v1175_v34  ;;  %v649_v43 = vmul.f32 %v637_v35, %v577_v47  ;;  %v651_v44 = vmul.f32 %v637_v35, %v583_v59  ;;  %v653_v45 = vmul.f32 %v637_v35, %v589_v5 }
 0x219   : > { %655 = vst [vmem:[%s1197_s24] sm:$0xff] %v639_v37  ;;  %657 = vst [vmem:[%s1197_s24 + $0x10] sm:$0xff] %v641_v39  ;;  %v640_v14 = vmul.f32 %v638_v36, %v1151_v15  ;;  %v642_v0 = vmul.f32 %v638_v36, %v1159_v23  ;;  %v644_v18 = vmul.f32 %v638_v36, %v1157_v22 }
 0x21a   : > { %659 = vst [vmem:[%s1197_s24 + $0x20] sm:$0xff] %v643_v40  ;;  %661 = vst [vmem:[%s1197_s24 + $0x30] sm:$0xff] %v645_v41  ;;  %v646_v26 = vmul.f32 %v638_v36, %v1171_v30  ;;  %v648_v15 = vmul.f32 %v638_v36, %v1179_v38  ;;  %v650_v22 = vmul.f32 %v638_v36, %v1189_v51 }
 0x21b   : > { %663 = vst [vmem:[%s1197_s24 + $0x40] sm:$0xff] %v647_v42  ;;  %665 = vst [vmem:[%s1197_s24 + $0x50] sm:$0xff] %v649_v43  ;;  %v652_v23 = vmul.f32 %v638_v36, %v585_v62  ;;  %v654_v30 = vmul.f32 %v638_v36, %v591_v8 }
 0x21c   : > { %667 = vst [vmem:[%s1197_s24 + $0x60] sm:$0xff] %v651_v44  ;;  %669 = vst [vmem:[%s1197_s24 + $0x70] sm:$0xff] %v653_v45 }
 0x21d   : > { %656 = vst [vmem:[%s1197_s24 + $0x8] sm:$0xff] %v640_v14  ;;  %658 = vst [vmem:[%s1197_s24 + $0x18] sm:$0xff] %v642_v0 }
 0x21e   : > { %660 = vst [vmem:[%s1197_s24 + $0x28] sm:$0xff] %v644_v18  ;;  %662 = vst [vmem:[%s1197_s24 + $0x38] sm:$0xff] %v646_v26 }
 0x21f   : > { %664 = vst [vmem:[%s1197_s24 + $0x48] sm:$0xff] %v648_v15  ;;  %666 = vst [vmem:[%s1197_s24 + $0x58] sm:$0xff] %v650_v22 }
 0x220   : > { %668 = vst [vmem:[%s1197_s24 + $0x68] sm:$0xff] %v652_v23  ;;  %670 = vst [vmem:[%s1197_s24 + $0x78] sm:$0xff] %v654_v30 }
 0x221   : > { %891 = shalt.err (!%p888_p5)
}
 0x222   : > { %s892_s12 = scalar_lea.hbm %s1216_s29, 2048  ;;  %s896_s15 = scalar_lea.hbm %s1287_s5, 4096 }
 0x223   : > { %p893_p6 = scmp.ne.s32.totalorder %s1216_s29, %s892_s12  ;;  %p897_p10 = scmp.lt.u32.totalorder %s1216_s29, %s1287_s5 }
 0x224   : > { %p898_p11 = scmp.lt.u32.totalorder %s896_s15, %s892_s12  ;;  %p900_p13 = scmp.lt.u32.totalorder %s892_s12, %s1216_s29 }
 0x225   : > { %p894_p7 = pnand %p893_p6, %p1033_p4 }
 0x226   : > { %p899_p12 = por %p898_p11, %p897_p10 }
 0x227   : > { %p895_p9 = pneg %p894_p7 }
 0x228   : > { %p901_p0 = por %p900_p13, %p899_p12 }
 0x22a   : > { %p902_p1 = pnand %p901_p0, %p895_p9 }
 0x22c   : > { %905 = shalt.err (!%p902_p1)
}
 0x22d   : > { %s961_s24 = smov 256   ;;  %s962_s21 = smov 16  }
 0x22e   : > { %813 = dma.vmem_to_hbm [thread:$0]  (%p1033_p4), %s1218_s25, 2048, %s1216_s29, %s1236_s7, %s961_s24, %s961_s24, %s962_s21  }
 0x22f PF: > { %p819_p2 = scmp.ge.s32.totalorder %s956_s23, 2  ;;  %s702_s27 = sand.u32 1, %s936_s18  }
 0x230   : > { %s703_s8 = scalar_lea.sflag [#allocation3], %s702_s27 }
 0x231   : > { %p816_p3 = pnand %p819_p2, %p1040_p8 }
 0x233   : > { %931 = dma.done.wait (!%p816_p3), %s703_s8, 2048  }
 0x234   : > { %933 = vsyncadd (!%p816_p3), %s703_s8, 4294965248  ;;  %s18_s23 = sadd.s32 1, %s956_s23   ;;  %s1290_s18 = smov %s940_s19 }
 0x235   : > { %p15_p5 = scmp.ge.s32.totalorder %s18_s23, 4   ;;  %s1291_s19 = smov %s944_s20 }
 0x236   : > { %s1292_s20 = smov %s1046_s6  ;;  %s1293_s21 = smov %s952_s22 }
 0x237   : > { %s1294_s22 = smov %s1296_s26  ;;  %17 = sbr.rel (!%p15_p5) target bundleno = 4 (0x4), region = 75 }
 0x23e   :  { %708 = vsyncpa [#allocation3], 1 }
 0x23f   :  { %710 = vsyncpa [#allocation3 + $0x1], 1 }

</bundles_post_ra>
